<compile_context>
chip_gen: v7x
topology: tpu7x:2x2x1
jax: 0.10.0
libtpu: 0.0.40
codegen_flags: <defaults>
</compile_context>

<pallas_src>
import functools

import jax
import jax.numpy as jnp
from jax.experimental import pallas as pl
from jax.experimental.pallas import tpu as pltpu

_LANE = 128
_MAX_WIDTH = 1024              # lane-dense slab width (multiple of 128 lanes)
_TARGET_BLOCK_BYTES = 2 << 20  # ~2 MiB per input block (double-buffered x3 arrays
                               # still fits comfortably in v7x's scoped VMEM)


def _choose_tiling(n):
    """Pick a (rows, width) lane-dense 2D slab and a block row count."""
    width = None
    for w in (_MAX_WIDTH, 512, 256, _LANE):
        if n % w == 0:
            width = w
            break
    if width is None:
        # TODO(synk): pad to a multiple of 128 lanes to support arbitrary lengths.
        raise ValueError(f"audio size {n} must be a multiple of {_LANE}")
    rows = n // width

    target_rows = max(1, _TARGET_BLOCK_BYTES // (width * 4))
    if rows <= target_rows:
        block_rows = rows  # block equals full array dim -> always legal
    else:
        block_rows = rows  # fallback: single full-array block
        for cand in range(min(rows, target_rows), 0, -1):
            if rows % cand == 0 and cand % 8 == 0:
                block_rows = cand
                break
    return rows, width, block_rows


# ----------------------------------------------------------------------------
# Kernel: Box-Muller normal sampling (full sin/cos pair) + scaled add.
# ----------------------------------------------------------------------------
def _noise_add_kernel(std_ref, x_ref, bits_ref, o_ref):
    # Uniform in (0, 1), strictly positive (24 random bits + 0.5), safe for log.
    bits = bits_ref[...]
    u = ((bits & jnp.uint32(0x00FFFFFF)).astype(jnp.float32) + 0.5) * (
        1.0 / 16777216.0
    )

    # Full Box-Muller pair: two uniforms -> two independent N(0, 1) samples.
    half = u.shape[-1] // 2
    u1 = u[:, :half]
    u2 = u[:, half:]
    r = jnp.sqrt(-2.0 * jnp.log(u1))
    theta = (2.0 * jnp.pi) * u2
    z = jnp.concatenate([r * jnp.cos(theta), r * jnp.sin(theta)], axis=-1)

    noise_std = std_ref[0]  # scalar-prefetched f32 in SMEM
    x = x_ref[...].astype(jnp.float32)
    o_ref[...] = (x + noise_std * z).astype(o_ref.dtype)


def _add_gaussian_noise(x2d, bits, noise_std, out_dtype, block_rows):
    rows, width = x2d.shape
    grid = (rows // block_rows,)
    return pl.pallas_call(
        _noise_add_kernel,
        out_shape=jax.ShapeDtypeStruct((rows, width), out_dtype),
        grid_spec=pltpu.PrefetchScalarGridSpec(
            num_scalar_prefetch=1,  # noise_std (f32[1]) -> SMEM
            grid=grid,
            in_specs=[
                pl.BlockSpec((block_rows, width), lambda i, std: (i, 0)),
                pl.BlockSpec((block_rows, width), lambda i, std: (i, 0)),
            ],
            out_specs=pl.BlockSpec((block_rows, width), lambda i, std: (i, 0)),
        ),
        compiler_params=pltpu.CompilerParams(
            dimension_semantics=("parallel",)
        ),
    )(noise_std, x2d, bits)


# ----------------------------------------------------------------------------
# Wrapper: full GaussianNoise.forward
# ----------------------------------------------------------------------------
@functools.partial(jax.jit, static_argnames=("min_snr", "max_snr"))
def gaussian_noise(audio, key, min_snr=0.0001, max_snr=0.01):
    orig_shape = audio.shape
    orig_dtype = audio.dtype

    n = audio.size
    rows, width, block_rows = _choose_tiling(n)
    x2d = audio.reshape(rows, width)

    # --- std = torch.std(audio)  (unbiased, over all elements), f32 ---
    std = jnp.std(audio.astype(jnp.float32), ddof=1)

    # --- noise_std ~ Uniform(min_snr*std, max_snr*std)  (scalar glue) ---
    k_unif, k_bits = jax.random.split(key)
    noise_std = jax.random.uniform(
        k_unif, (), jnp.float32, minval=min_snr * std, maxval=max_snr * std
    )

    # --- raw uniform bits for Box-Muller (one u32 per output sample) ---
    bits = jax.random.bits(k_bits, (rows, width), dtype=jnp.uint32)

    # --- noise ~ N(0, noise_std); out = audio + noise (Pallas hot path) ---
    out2d = _add_gaussian_noise(
        x2d, bits, noise_std.reshape(1), orig_dtype, block_rows
    )
    return out2d.reshape(orig_shape)


if __name__ == "__main__":
    key = jax.random.PRNGKey(0)
    k_data, k_noise = jax.random.split(key)

    # audio: (batch=2, channels=1, samples=2048)
    audio = jax.random.normal(k_data, (2, 1, 2048), dtype=jnp.float32) * 0.5

    out = gaussian_noise(audio, k_noise, min_snr=0.0001, max_snr=0.01)
    out = jax.block_until_ready(out)

    assert out.shape == audio.shape and out.dtype == audio.dtype
    # Noise std is <= 1% of signal std, so output must stay close to input.
    max_dev = float(jnp.max(jnp.abs(out - audio)))
    assert max_dev < 0.2, f"noise unexpectedly large: {max_dev}"

    print("KERNEL_OK")
</pallas_src>

<mosaic_0001>
module attributes {stable_mosaic.version = 11 : i64} {
  func.func @_noise_add_kernel(%arg0: i32, %arg1: memref<1xf32, #tpu.memory_space<smem>>, %arg2: memref<4x1024xf32, #tpu.memory_space<vmem>>, %arg3: memref<4x1024xi32, #tpu.memory_space<vmem>>, %arg4: memref<4x1024xf32, #tpu.memory_space<vmem>>) attributes {dimension_semantics = [#tpu.dimension_semantics<parallel>], iteration_bounds = array<i64: 1>, scalar_prefetch = 1 : i64, scratch_operands = 0 : i64, tpu.core_type = #tpu.core_type<tc>, window_params = [{transform_indices = @transform_0, window_bounds = array<i64: 4, 1024>}, {transform_indices = @transform_1, window_bounds = array<i64: 4, 1024>}, {transform_indices = @transform_2, window_bounds = array<i64: 4, 1024>}]} {
    %c0 = arith.constant 0 : index
    %c0_0 = arith.constant 0 : index
    %0 = vector.load %arg3[%c0, %c0_0] : memref<4x1024xi32, #tpu.memory_space<vmem>>, vector<4x1024xi32>
    %c16777215_i32 = arith.constant 16777215 : i32
    %1 = vector.broadcast %c16777215_i32 : i32 to vector<4x1024xi32>
    %2 = arith.andi %0, %1 : vector<4x1024xi32>
    %3 = arith.uitofp %2 : vector<4x1024xi32> to vector<4x1024xf32>
    %cst = arith.constant 5.000000e-01 : f32
    %4 = vector.broadcast %cst : f32 to vector<4x1024xf32>
    %5 = arith.addf %3, %4 : vector<4x1024xf32>
    %cst_1 = arith.constant 5.96046448E-8 : f32
    %6 = vector.broadcast %cst_1 : f32 to vector<4x1024xf32>
    %7 = arith.mulf %5, %6 : vector<4x1024xf32>
    %8 = vector.extract_strided_slice %7 {offsets = [0, 0], sizes = [4, 512], strides = [1, 1]} : vector<4x1024xf32> to vector<4x512xf32>
    %9 = vector.extract_strided_slice %7 {offsets = [0, 512], sizes = [4, 512], strides = [1, 1]} : vector<4x1024xf32> to vector<4x512xf32>
    %10 = math.log %8 : vector<4x512xf32>
    %cst_2 = arith.constant -2.000000e+00 : f32
    %11 = vector.broadcast %cst_2 : f32 to vector<4x512xf32>
    %12 = arith.mulf %11, %10 : vector<4x512xf32>
    %13 = math.sqrt %12 : vector<4x512xf32>
    %cst_3 = arith.constant 6.28318548 : f32
    %14 = vector.broadcast %cst_3 : f32 to vector<4x512xf32>
    %15 = arith.mulf %14, %9 : vector<4x512xf32>
    %16 = math.cos %15 : vector<4x512xf32>
    %17 = arith.mulf %13, %16 : vector<4x512xf32>
    %18 = math.sin %15 : vector<4x512xf32>
    %19 = arith.mulf %13, %18 : vector<4x512xf32>
    %20 = tpu.concatenate %17, %19 in 1 : vector<4x512xf32>, vector<4x512xf32> -> vector<4x1024xf32>
    %c0_4 = arith.constant 0 : index
    %21 = memref.load %arg1[%c0_4] : memref<1xf32, #tpu.memory_space<smem>>
    %c0_5 = arith.constant 0 : index
    %c0_6 = arith.constant 0 : index
    %22 = vector.load %arg2[%c0_5, %c0_6] : memref<4x1024xf32, #tpu.memory_space<vmem>>, vector<4x1024xf32>
    %23 = vector.broadcast %21 : f32 to vector<4x1024xf32>
    %24 = arith.mulf %23, %20 : vector<4x1024xf32>
    %25 = arith.addf %22, %24 : vector<4x1024xf32>
    %c0_7 = arith.constant 0 : index
    %c0_8 = arith.constant 0 : index
    %26 = vector.load %arg4[%c0_7, %c0_8] : memref<4x1024xf32, #tpu.memory_space<vmem>>, vector<4x1024xf32>
    tpu.vector_store %arg4[%c0_7, %c0_8], %25 {strides = array<i32>} : memref<4x1024xf32, #tpu.memory_space<vmem>>, vector<4x1024xf32>,
    return
  }
  func.func @transform_0(%arg0: i32, %arg1: memref<1xf32, #tpu.memory_space<smem>>) -> (i32, i32) {
    %c0_i32 = arith.constant 0 : i32
    %c0_i32_0 = arith.constant 0 : i32
    return %arg0, %c0_i32 : i32, i32
  }
  func.func @transform_1(%arg0: i32, %arg1: memref<1xf32, #tpu.memory_space<smem>>) -> (i32, i32) {
    %c0_i32 = arith.constant 0 : i32
    %c0_i32_0 = arith.constant 0 : i32
    return %arg0, %c0_i32 : i32, i32
  }
  func.func @transform_2(%arg0: i32, %arg1: memref<1xf32, #tpu.memory_space<smem>>) -> (i32, i32) {
    %c0_i32 = arith.constant 0 : i32
    %c0_i32_0 = arith.constant 0 : i32
    return %arg0, %c0_i32 : i32, i32
  }
}

</mosaic_0001>

<bundles_post_ra>
// kernel: gaussian_noise.3
= control target key start
LH: loop header
LB: loop body
LE: loop exit
PB: predicated region body
PF: predicated region fallthrough
CT: control target
= control target key end

     0   :  { %v593_v52 = vmov 683565275   ;;  %v594_v54 = vmov 2475754826   ;;  %v595_v56 = vmov 2131351028   ;;  %s757_s2 = inlined_call_operand.vmem [shape: u32[4,1024], index: 2, kind: input, shape index: {}]   ;;  %s758_s0 = inlined_call_operand.<no memory space> [shape: f32[1], index: 0, kind: input, shape index: {}]   ;;  %s759_s1 = inlined_call_operand.vmem [shape: f32[4,1024], index: 1, kind: input, shape index: {}]   ;;  %s760_s3 = inlined_call_operand.vmem [shape: f32[4,1024], index: 3, kind: output, shape index: {}]  }
   0x1   :  { %v15_v0 = vld [vmem:[%s757_s2 + $0x10] sm:$0xff]  ;;  %v16_v1 = vld [vmem:[%s757_s2 + $0x18] sm:$0xff]  ;;  %v13_v16 = vld [vmem:[%s757_s2] sm:$0xff]  ;;  %v596_v58 = vmov 2102212464  }
   0x2   :  { %v19_v2 = vand.u32 16777215, %v15_v0  ;;  %v20_v3 = vand.u32 16777215, %v16_v1  ;;  %v17_v21 = vand.u32 16777215, %v13_v16 }
   0x3   :  { %v14_v25 = vld [vmem:[%s757_s2 + $0x8] sm:$0xff]  ;;  %v597_v60 = vmov 920167782  }
   0x4   :  { %v33_v4 = vshrl.u32 %v19_v2, 16  ;;  %v34_v5 = vand.u32 65535, %v19_v2  ;;  %v39_v6 = vshrl.u32 %v20_v3, 16  ;;  %v40_v7 = vand.u32 65535, %v20_v3 }
   0x5   :  { %v21_v26 = vshrl.u32 %v17_v21, 16  ;;  %v18_v30 = vand.u32 16777215, %v14_v25  ;;  %v22_v33 = vand.u32 65535, %v17_v21 }
   0x6   :  { %v35_v8 = vcvt.s32.f32 %v33_v4  ;;  %v37_v9 = vcvt.s32.f32 %v34_v5  ;;  %v41_v10 = vcvt.s32.f32 %v39_v6  ;;  %v43_v11 = vcvt.s32.f32 %v40_v7 }
   0x7   :  { %v23_v34 = vcvt.s32.f32 %v21_v26  ;;  %v638_v38 = vshrl.u32 %v18_v30, 16  ;;  %v25_v41 = vcvt.s32.f32 %v22_v33  ;;  %v643_v45 = vand.u32 65535, %v18_v30 }
   0x8   :  { %v36_v12 = vmul.f32 65536.0, %v35_v8  ;;  %v42_v13 = vmul.f32 65536.0, %v41_v10  ;;  %v598_v6 = vmov 1326507024  }
   0x9   :  { %v24_v40 = vmul.f32 65536.0, %v23_v34  ;;  %v29_v49 = vcvt.s32.f32 %v638_v38 }
   0xa   :  { %v38_v14 = vadd.f32 %v37_v9, %v36_v12  ;;  %v44_v15 = vadd.f32 %v43_v11, %v42_v13 }
   0xb   :  { %v26_v48 = vadd.f32 %v25_v41, %v24_v40 }
   0xc   :  { %v47_v17 = vadd.f32 0.5, %v38_v14  ;;  %v48_v18 = vadd.f32 0.5, %v44_v15 }
   0xe   :  { %v51_v19 = vmul.f32 5.9604645e-08, %v47_v17  ;;  %v52_v20 = vmul.f32 5.9604645e-08, %v48_v18 }
  0x10   :  { %v628_v22 = vmul.f32 6.2831855, %v51_v19  ;;  %v630_v23 = vmul.f32 6.2831855, %v52_v20 }
  0x12   :  { %v78_v24 = vand.u32 2139095040, %v628_v22  ;;  %v181_v27 = vand.u32 2139095040, %v630_v23  ;;  %v75_v31 = vand.u32 2147483647, %v628_v22  ;;  %v178_v44 = vand.u32 2147483647, %v630_v23 }
  0x13   :  { %vm77_vm14 = vcmp.lt.s32.totalorder %v628_v22, 0 }
  0x14   :  { %v79_v28 = vshrl.u32 %v78_v24, 23  ;;  %v182_v29 = vshrl.u32 %v181_v27, 23  ;;  %v82_v39 = vand.u32 8388607, %v75_v31  ;;  %v185_v62 = vand.u32 8388607, %v178_v44 }
  0x15   :  { %vm76_vm15 = vcmp.le.f32.partialorder %v75_v31, 0.7853982 }
  0x16   :  { %v547_v32 = vadd.s32 4294967169, %v79_v28  ;;  %v551_v35 = vadd.s32 4294967169, %v182_v29  ;;  %v83_v46 = vor.u32 8388608, %v82_v39  ;;  %v186_v19 = vor.u32 8388608, %v185_v62 }
  0x18   :  { %v85_v36 = vadd.s32 1, %v547_v32  ;;  %v188_v37 = vadd.s32 1, %v551_v35  ;;  %v648_v3 = vshll.u32 %v83_v46, 8  ;;  %v45_v32 = vadd.f32 0.5, %v26_v48 }
  0x19   :  { %v226_v46 = vshll.u32 %v186_v19, 8 }
  0x1a   :  { %vm86_vm0 = vcmp.gt.s32.totalorder %v85_v36, 0  ;;  %vm189_vm1 = vcmp.gt.s32.totalorder %v188_v37, 0 }
  0x1b   :  { %v87_v42 = vsel %vm86_vm0, %v85_v36, 0  ;;  %v190_v47 = vsel %vm189_vm1, %v188_v37, 0  ;;  %vm180_vm1 = vcmp.lt.s32.totalorder %v630_v23, 0 }
  0x1c   :  { %v89_v43 = vand.u32 31, %v87_v42  ;;  %v88_v50 = vshrl.u32 %v87_v42, 5  ;;  %v192_v63 = vand.u32 31, %v190_v47  ;;  %v191_v35 = vshrl.u32 %v190_v47, 5 }
  0x1e   :  { %v90_v51 = vsub.s32 32, %v89_v43  ;;  %v92_v53 = vshll.u32 %v593_v52, %v89_v43  ;;  %v95_v55 = vshll.u32 %v594_v54, %v89_v43  ;;  %v98_v57 = vshll.u32 %v595_v56, %v89_v43 }
  0x1f   :  { %v101_v59 = vshll.u32 %v596_v58, %v89_v43  ;;  %v104_v61 = vshll.u32 %v597_v60, %v89_v43  ;;  %vm107_vm2 = vcmp.lt.s32.totalorder %v88_v50, 1  ;;  %vm110_vm3 = vcmp.lt.s32.totalorder %v88_v50, 4 }
  0x20   :  { %v93_v0 = vshrl.u32 %v594_v54, %v90_v51  ;;  %v96_v1 = vshrl.u32 %v595_v56, %v90_v51  ;;  %v99_v2 = vshrl.u32 %v596_v58, %v90_v51  ;;  %v91_v4 = vshrl.u32 %v593_v52, %v90_v51 }
  0x21   :  { %v102_v5 = vshrl.u32 %v597_v60, %v90_v51  ;;  %v105_v7 = vshrl.u32 %v598_v6, %v90_v51  ;;  %vm109_vm4 = vcmp.lt.s32.totalorder %v88_v50, 3  ;;  %v193_v13 = vsub.s32 32, %v192_v63 }
  0x22   :  { %v94_v8 = vor.u32 %v93_v0, %v92_v53  ;;  %v97_v9 = vor.u32 %v96_v1, %v95_v55  ;;  %v100_v10 = vor.u32 %v99_v2, %v98_v57  ;;  %vm108_vm5 = vcmp.lt.s32.totalorder %v88_v50, 2 }
  0x23   :  { %v103_v11 = vor.u32 %v102_v5, %v101_v59  ;;  %v106_v12 = vor.u32 %v105_v7, %v104_v61  ;;  %v195_v20 = vshll.u32 %v593_v52, %v192_v63  ;;  %v196_v29 = vshrl.u32 %v594_v54, %v193_v13 }
  0x24   :  { %v112_v14 = vsel %vm110_vm3, %v100_v10, 2102212464  ;;  %v115_v15 = vsel %vm107_vm2, %v94_v8, %v97_v9  ;;  %v119_v16 = vsel %vm107_vm2, %v97_v9, %v100_v10  ;;  %v111_v21 = vsel %vm107_vm2, %v91_v4, %v94_v8 }
  0x25   :  { %v116_v17 = vsel %vm110_vm3, %v103_v11, 920167782  ;;  %v120_v18 = vsel %vm110_vm3, %v106_v12, 1326507024  ;;  %v113_v24 = vsel %vm109_vm4, %v97_v9, %v112_v14  ;;  %v198_v30 = vshll.u32 %v594_v54, %v192_v63 }
  0x26   :  { %v117_v25 = vsel %vm109_vm4, %v100_v10, %v116_v17  ;;  %v121_v26 = vsel %vm109_vm4, %v103_v11, %v120_v18  ;;  %v114_v36 = vsel %vm108_vm5, %v111_v21, %v113_v24  ;;  %v199_v40 = vshrl.u32 %v595_v56, %v193_v13 }
  0x27   :  { %v118_v27 = vsel %vm108_vm5, %v115_v15, %v117_v25  ;;  %v122_v28 = vsel %vm108_vm5, %v119_v16, %v121_v26  ;;  %v194_v41 = vshrl.u32 %v593_v52, %v193_v13  ;;  %v201_v42 = vshll.u32 %v595_v56, %v192_v63 }
  0x28   :  { %v656_v33 = vmul.u32.u64.low %v648_v3, %v122_v28  ;;  %v657_v34 = vmul.u32.u64.high %v648_v3, %v122_v28, %v656_v33  ;;  %v661_v37 = vmul.u32.u64.low %v648_v3, %v118_v27  ;;  %v662_v39 = vmul.u32.u64.high %v648_v3, %v118_v27, %v661_v37 }
  0x29   :  { %v202_v43 = vshrl.u32 %v596_v58, %v193_v13  ;;  %v197_v51 = vor.u32 %v196_v29, %v195_v20  ;;  %v200_v53 = vor.u32 %v199_v40, %v198_v30  ;;  %v204_v48 = vshll.u32 %v596_v58, %v192_v63 }
  0x2a   :  { %v205_v54 = vshrl.u32 %v597_v60, %v193_v13  ;;  %v130_v55 = vmul.u32 %v648_v3, %v114_v36  ;;  %vm132_vm6 = vc.u32 %v657_v34, %v661_v37  ;;  %v207_v50 = vshll.u32 %v597_v60, %v192_v63 }
  0x2b   :  { %v203_v47 = vor.u32 %v202_v43, %v201_v42  ;;  %v133_v57 = vadd.s32 1, %v662_v39  ;;  %v208_v61 = vshrl.u32 %v598_v6, %v193_v13  ;;  %vm210_vm7 = vcmp.lt.s32.totalorder %v191_v35, 1 }
  0x2c   :  { %v206_v59 = vor.u32 %v205_v54, %v204_v48  ;;  %vm211_vm8 = vcmp.lt.s32.totalorder %v191_v35, 2  ;;  %vm212_vm9 = vcmp.lt.s32.totalorder %v191_v35, 3  ;;  %vm213_vm10 = vcmp.lt.s32.totalorder %v191_v35, 4 }
  0x2d   :  { %v214_v52 = vsel %vm210_vm7, %v194_v41, %v197_v51  ;;  %v134_v56 = vsel %vm132_vm6, %v133_v57, %v662_v39  ;;  %v209_v58 = vor.u32 %v208_v61, %v207_v50  ;;  %v215_v62 = vsel %vm213_vm10, %v203_v47, 2102212464 }
  0x2e   :  { %v218_v0 = vsel %vm210_vm7, %v197_v51, %v200_v53  ;;  %v135_v1 = vadd.s32 %v134_v56, %v130_v55  ;;  %v216_v2 = vsel %vm212_vm9, %v200_v53, %v215_v62  ;;  %v219_v3 = vsel %vm213_vm10, %v206_v59, 920167782 }
  0x2f   :  { %v222_v4 = vsel %vm210_vm7, %v200_v53, %v203_v47  ;;  %v30_v60 = vmul.f32 65536.0, %v29_v49  ;;  %v31_v63 = vcvt.s32.f32 %v643_v45  ;;  %v220_v5 = vsel %vm212_vm9, %v203_v47, %v219_v3 }
  0x30   :  { %v223_v6 = vsel %vm213_vm10, %v209_v58, 1326507024  ;;  %v49_v7 = vmul.f32 5.9604645e-08, %v45_v32  ;;  %v136_v8 = vadd.s32 536870912, %v135_v1  ;;  %v221_v9 = vsel %vm211_vm8, %v218_v0, %v220_v5 }
  0x31   :  { %v224_v10 = vsel %vm212_vm9, %v206_v59, %v223_v6  ;;  %v217_v11 = vsel %vm211_vm8, %v214_v52, %v216_v2  ;;  %v679_v13 = vmul.u32.u64.low %v226_v46, %v221_v9  ;;  %v680_v14 = vmul.u32.u64.high %v226_v46, %v221_v9, %v679_v13 }
  0x32   :  { %v225_v12 = vsel %vm211_vm8, %v222_v4, %v224_v10  ;;  %v137_v38 = vshrl.u32 %v136_v8, 30  ;;  %v32_v45 = vadd.f32 %v31_v63, %v30_v60  ;;  %v233_v17 = vmul.u32 %v226_v46, %v217_v11 }
  0x33   :  { %v682_v49 = vmul.u32.u64.low %v226_v46, %v225_v12  ;;  %v683_v15 = vmul.u32.u64.high %v226_v46, %v225_v12, %v682_v49  ;;  %577 = vlog2.f32 %v49_v7  ;;  %v236_v18 = vadd.s32 1, %v680_v14 }
  0x34   :  { %v138_v16 = vshll.u32 %v137_v38, 30  ;;  %v46_v20 = vadd.f32 0.5, %v32_v45  ;;  %v131_v36 = vadd.s32 %v661_v37, %v657_v34  ;;  %v161_v56 = vsub.s32 4, %v137_v38 }
  0x35   :  { %vm235_vm11 = vc.u32 %v683_v15, %v679_v13  ;;  %v234_v58 = vadd.s32 %v679_v13, %v683_v15  ;;  %vm179_vm2 = vcmp.le.f32.partialorder %v178_v44, 0.7853982  ;;  %vm167_vm10 = vweird.f32 %v628_v22 }
  0x36   :  { %v139_v19 = vsub.s32 %v135_v1, %v138_v16  ;;  %v237_v21 = vsel %vm235_vm11, %v236_v18, %v680_v14  ;;  %v50_v27 = vmul.f32 5.9604645e-08, %v46_v20  ;;  %v162_v63 = vsel %vm77_vm14, %v161_v56, %v137_v38 }
  0x37   :  { %v238_v25 = vadd.s32 %v237_v21, %v233_v17  ;;  %v164_v10 = vsel %vm76_vm15, 0, %v162_v63 }
  0x38   :  { %v141_v24 = vsub.s32 0, %v139_v19  ;;  %579 = vlog2.f32 %v50_v27  ;;  %v376_v15 = vadd.s32 3, %v164_v10  ;;  %v168_v17 = vand.u32 3, %v164_v10 }
  0x39   :  { %v239_v28 = vadd.s32 536870912, %v238_v25 }
  0x3a   :  { %v548_v26 = vmin.u32 %v141_v24, %v139_v19  ;;  %v377_v18 = vand.u32 3, %v376_v15  ;;  %vm173_vm4 = vcmp.eq.s32.totalorder %v168_v17, 2  ;;  %vm170_vm6 = vcmp.eq.s32.totalorder %v168_v17, 0 }
  0x3b   :  { %v688_v30 = vshrl.u32 %v239_v28, 30  ;;  %vm169_vm8 = vcmp.lt.s32.totalorder %v168_v17, 2 }
  0x3c   :  { %v143_v29 = vclz %v548_v26  ;;  %vm382_vm5 = vcmp.eq.s32.totalorder %v377_v18, 2  ;;  %vm379_vm7 = vcmp.eq.s32.totalorder %v377_v18, 0  ;;  %vm378_vm9 = vcmp.lt.s32.totalorder %v377_v18, 2  ;;  %v507_v18 = vld [vmem:[%s759_s1 + $0x8] sm:$0xff] }
  0x3d   :  { %v578_v33 = vpop.eup %577  ;;  %v241_v35 = vshll.u32 %v688_v30, 30  ;;  %v264_v38 = vsub.s32 4, %v688_v30 }
  0x3e   :  { %v549_v32 = vadd.s32 4294967294, %v143_v29  ;;  %v54_v41 = vmul.f32 0.6931472, %v578_v33 }
  0x3f   :  { %v242_v40 = vsub.s32 %v238_v25, %v241_v35  ;;  %v265_v20 = vsel %vm180_vm1, %v264_v38, %v688_v30 }
  0x40   :  { %vm550_vm12 = vcmp.lt.s32.totalorder %v549_v32, 0  ;;  %v693_v55 = vmul.f32 -2.0, %v54_v41  ;;  %v267_v28 = vsel %vm179_vm2, 0, %v265_v20 }
  0x41   :  { %v146_v39 = vsel %vm550_vm12, 0, %v549_v32  ;;  %v244_v51 = vsub.s32 0, %v242_v40 }
  0x42   :  { %v147_v42 = vsub.s32 32, %v146_v39  ;;  %v148_v43 = vshll.u32 %v139_v19, %v146_v39  ;;  %v151_v46 = vsub.s32 4294967266, %v146_v39  ;;  %v580_v52 = vpop.eup %579  ;;  %581 = vrsqrt.f32 %v693_v55 }
  0x43   :  { %v552_v54 = vmin.u32 %v244_v51, %v242_v40  ;;  %v56_v62 = vmul.f32 0.6931472, %v580_v52  ;;  %vm61_vm0 = vcmp.eq.f32.partialorder %v693_v55, inf  ;;  %vm63_vm3 = vcmp.eq.f32.partialorder %v693_v55, 0.0 }
  0x44   :  { %v149_v53 = vshrl.u32 %v131_v36, %v147_v42  ;;  %v152_v48 = vadd.s32 127, %v151_v46  ;;  %v64_v24 = vand.u32 2147483648, %v693_v55  ;;  %v480_v36 = vadd.s32 3, %v267_v28 }
  0x45   :  { %v246_v57 = vclz %v552_v54  ;;  %v700_v7 = vmul.f32 -2.0, %v56_v62  ;;  %v510_v46 = vstv %s758_s0 }
  0x46   :  { %v150_v47 = vor.u32 %v149_v53, %v148_v43  ;;  %v153_v50 = vshll.u32 %v152_v48, 23  ;;  %v271_v48 = vand.u32 3, %v267_v28 }
  0x47   :  { %v553_v34 = vadd.s32 4294967294, %v246_v57  ;;  %vm68_vm11 = vcmp.eq.f32.partialorder %v700_v7, inf  ;;  %vm70_vm12 = vcmp.eq.f32.partialorder %v700_v7, 0.0 }
  0x48   :  { %v154_v59 = vor.u32 4788187, %v153_v50  ;;  %v157_v61 = vcvt.s32.f32 %v150_v47  ;;  %v481_v47 = vand.u32 3, %v480_v36 }
  0x49   :  { %vm554_vm13 = vcmp.lt.s32.totalorder %v553_v34, 0 }
  0x4a   :  { %v155_v37 = vand.u32 2147483647, %v154_v59  ;;  %v249_v1 = vsel %vm554_vm13, 0, %v553_v34  ;;  %v71_v34 = vand.u32 2147483648, %v700_v7  ;;  %vm276_vm13 = vcmp.eq.s32.totalorder %v271_v48, 2 }
  0x4b   :  { %v250_v2 = vsub.s32 32, %v249_v1  ;;  %v251_v3 = vshll.u32 %v242_v40, %v249_v1  ;;  %v254_v4 = vsub.s32 4294967266, %v249_v1  ;;  %v506_v1 = vld [vmem:[%s759_s1] sm:$0xff] }
  0x4c   :  { %v158_v0 = vmul.f32 %v157_v61, %v155_v37  ;;  %v582_v49 = vpop.eup %581 }
  0x4d   :  { %v252_v5 = vshrl.u32 %v234_v58, %v250_v2  ;;  %v255_v6 = vadd.s32 127, %v254_v4  ;;  %v60_v45 = vmul.f32 %v582_v49, %v693_v55  ;;  %v508_v2 = vld [vmem:[%s759_s1 + $0x10] sm:$0xff] }
  0x4e   :  { %v159_v60 = vxor.u32 2147483648, %v158_v0 }
  0x4f   :  { %v253_v11 = vor.u32 %v252_v5, %v251_v3  ;;  %v256_v12 = vshll.u32 %v255_v6, 23  ;;  %v62_v21 = vsel %vm61_vm0, %v693_v55, %v60_v45  ;;  %vm273_vm0 = vcmp.eq.s32.totalorder %v271_v48, 0 }
  0x50   :  { %v160_v8 = vsel %vm77_vm14, %v159_v60, %v158_v0  ;;  %v65_v39 = vsel %vm63_vm3, %v64_v24, %v62_v21  ;;  %vm486_vm14 = vcmp.eq.s32.totalorder %v481_v47, 2  ;;  %vm270_vm3 = vweird.f32 %v630_v23 }
  0x51   :  { %v163_v9 = vsel %vm76_vm15, %v628_v22, %v160_v8  ;;  %v257_v13 = vor.u32 4788187, %v256_v12  ;;  %v260_v14 = vcvt.s32.f32 %v253_v11  ;;  %vm272_vm15 = vcmp.lt.s32.totalorder %v271_v48, 2 }
  0x52   :  { %583 = vcosq.f32 %v163_v9 }
  0x53   :  { %585 = vsinq.f32 %v163_v9  ;;  %v258_v31 = vand.u32 2147483647, %v257_v13 }
  0x54   :  { %587 = vrsqrt.f32 %v700_v7 }
  0x55   :  { %v261_v16 = vmul.f32 %v260_v14, %v258_v31 }
  0x57   :  { %v262_v19 = vxor.u32 2147483648, %v261_v16 }
  0x59   :  { %v263_v25 = vsel %vm180_vm1, %v262_v19, %v261_v16  ;;  %vm483_vm1 = vcmp.eq.s32.totalorder %v481_v47, 0  ;;  %v509_v19 = vld [vmem:[%s759_s1 + $0x18] sm:$0xff] }
  0x5a   :  { %v266_v27 = vsel %vm179_vm2, %v630_v23, %v263_v25  ;;  %vm482_vm2 = vcmp.lt.s32.totalorder %v481_v47, 2 }
  0x5b   :  { %589 = vcosq.f32 %v266_v27 }
  0x5c   :  { %v584_v26 = vpop.eup %583  ;;  %591 = vsinq.f32 %v266_v27 }
  0x5d   :  { %v586_v29 = vpop.eup %585  ;;  %v174_v32 = vxor.u32 2147483648, %v584_v26 }
  0x5e   :  { %v171_v44 = vxor.u32 2147483648, %v586_v29  ;;  %v588_v30 = vpop.eup %587 }
  0x5f   :  { %v175_v33 = vsel %vm173_vm4, %v174_v32, %v586_v29  ;;  %v384_v35 = vsel %vm382_vm5, %v174_v32, %v586_v29  ;;  %v67_v51 = vmul.f32 %v588_v30, %v700_v7 }
  0x60   :  { %v172_v40 = vsel %vm170_vm6, %v584_v26, %v171_v44  ;;  %v381_v41 = vsel %vm379_vm7, %v584_v26, %v171_v44 }
  0x61   :  { %v176_v42 = vsel %vm169_vm8, %v172_v40, %v175_v33  ;;  %v385_v43 = vsel %vm378_vm9, %v381_v41, %v384_v35  ;;  %v69_v52 = vsel %vm68_vm11, %v700_v7, %v67_v51 }
  0x62   :  { %v177_v22 = vsel %vm167_vm10, nan, %v176_v42  ;;  %v386_v53 = vsel %vm167_vm10, nan, %v385_v43  ;;  %v72_v63 = vsel %vm70_vm12, %v71_v34, %v69_v52 }
  0x63   :  { %v281_v54 = vmul.f32 %v177_v22, %v65_v39  ;;  %v491_v50 = vmul.f32 %v386_v53, %v65_v39 }
  0x65   :  { %v495_v55 = vcombine.high %v281_v54, %v281_v54  ;;  %v501_v57 = vcombine.high %v491_v50, %v491_v50  ;;  %v511_v59 = vmul.f32 %v510_v46, %v281_v54  ;;  %v515_v61 = vmul.f32 %v510_v46, %v491_v50  ;;  %v590_v37 = vpop.eup %589 }
  0x66   :  { %v592_v62 = vpop.eup %591  ;;  %v277_v0 = vxor.u32 2147483648, %v590_v37 }
  0x67   :  { %v512_v56 = vmul.f32 %v510_v46, %v495_v55  ;;  %v516_v58 = vmul.f32 %v510_v46, %v501_v57  ;;  %v274_v3 = vxor.u32 2147483648, %v592_v62 }
  0x68   :  { %v278_v5 = vsel %vm276_vm13, %v277_v0, %v592_v62  ;;  %v488_v6 = vsel %vm486_vm14, %v277_v0, %v592_v62 }
  0x69   :  { %v527_v4 = vcombine.low %v511_v59, %v512_v56  ;;  %v529_v60 = vcombine.low %v515_v61, %v516_v58  ;;  %v275_v8 = vsel %vm273_vm0, %v590_v37, %v274_v3  ;;  %v485_v9 = vsel %vm483_vm1, %v590_v37, %v274_v3 }
  0x6a   :  { %v279_v12 = vsel %vm272_vm15, %v275_v8, %v278_v5  ;;  %v489_v13 = vsel %vm482_vm2, %v485_v9, %v488_v6 }
  0x6b   :  { %v535_v10 = vadd.f32 %v527_v4, %v506_v1  ;;  %v537_v11 = vadd.f32 %v529_v60, %v508_v2  ;;  %v280_v14 = vsel %vm270_vm3, nan, %v279_v12  ;;  %v490_v49 = vsel %vm270_vm3, nan, %v489_v13 }
  0x6c   :  { %v282_v23 = vmul.f32 %v280_v14, %v72_v63  ;;  %v492_v7 = vmul.f32 %v490_v49, %v72_v63 }
  0x6d   :  { %539 = vst [vmem:[%s760_s3] sm:$0xff] %v535_v10  ;;  %541 = vst [vmem:[%s760_s3 + $0x10] sm:$0xff] %v537_v11 }
  0x6e   :  { %v496_v15 = vcombine.high %v282_v23, %v282_v23  ;;  %v502_v31 = vcombine.high %v492_v7, %v492_v7  ;;  %v513_v38 = vmul.f32 %v510_v46, %v282_v23  ;;  %v517_v45 = vmul.f32 %v510_v46, %v492_v7 }
  0x70   :  { %v514_v16 = vmul.f32 %v510_v46, %v496_v15  ;;  %v518_v17 = vmul.f32 %v510_v46, %v502_v31 }
  0x72   :  { %v528_v20 = vcombine.low %v513_v38, %v514_v16  ;;  %v530_v21 = vcombine.low %v517_v45, %v518_v17 }
  0x74   :  { %v536_v24 = vadd.f32 %v528_v20, %v507_v18  ;;  %v538_v25 = vadd.f32 %v530_v21, %v509_v19 }
  0x76   :  { %540 = vst [vmem:[%s760_s3 + $0x8] sm:$0xff] %v536_v24  ;;  %542 = vst [vmem:[%s760_s3 + $0x18] sm:$0xff] %v538_v25 }

</bundles_post_ra>
